<compile_context>
chip_gen: v7x
topology: tpu7x:2x2x1
jax: 0.10.0
libtpu: 0.0.40
codegen_flags: <defaults>
</compile_context>

<pallas_src>
import functools

import jax
import jax.numpy as jnp
from jax.experimental import pallas as pl
from jax.experimental.pallas import tpu as pltpu


_LANE = 128
_MAX_FOLD = 256          # max unrolled 128-lane folds per chunk (bounds jaxpr size)
_MIB = 1024 * 1024


def _ceil_to(a: int, b: int) -> int:
    return -(-a // b) * b


def _min_value(dtype):
    """Identity element for max in this dtype (safe for inf-less fp8 floats)."""
    dtype = jnp.dtype(dtype)
    if jnp.issubdtype(dtype, jnp.floating):
        name = dtype.name
        if name.endswith("fn") or name.endswith("fnuz"):
            # float8_e4m3fn-style dtypes have no +/-inf; -inf would become NaN.
            return float(jnp.finfo(dtype).min)
        return -float("inf")
    if jnp.issubdtype(dtype, jnp.integer):
        return int(jnp.iinfo(dtype).min)
    return False  # bool: False is the identity for max


def _choose_tiles(R: int, L: int, itemsize: int, target_bytes: int):
    """Pick (row_tile, l_tile) for the flattened (R, L) input.

    Invariants (every BlockSpec dim is full-extent or (8,128)-aligned, and the
    (1, row_tile) output store stays legal / lane-dense):
      * one row block    -> row_tile == R
      * many row blocks  -> row_tile % 128 == 0
      * many L blocks    -> l_tile  % 128 == 0
    """
    target_elems = max(8 * _LANE, target_bytes // itemsize)

    if R * L <= target_elems:
        # (a) Whole problem in a single block.
        row_tile, l_tile = R, L
    elif L * _LANE <= target_elems:
        # (b) Full-L blocks, several lane-aligned row blocks: one contiguous
        #     DMA run per block, no reduction axis, no accumulator.
        row_tile = (target_elems // L // _LANE) * _LANE      # in [128, R)
        l_tile = L
    else:
        # (c) L must be chunked: reduction grid axis + running-max accumulator.
        row_tile = R if R < 2 * _LANE else _LANE
        l_tile = (target_elems // max(row_tile, 1) // _LANE) * _LANE
        l_tile = max(_LANE, min(l_tile, _MAX_FOLD * _LANE))

    # Megacore (v7x has 2 TensorCores): ensure the "parallel" row axis has at
    # least 2 blocks whenever R allows.  Costs one extra ~0.35 us step on
    # single-TC chips; wins ~2x HBM bandwidth on v7x.
    if row_tile >= R and R >= 2 * _LANE:
        row_tile = _ceil_to(-(-R // 2), _LANE)
    return row_tile, l_tile


@functools.partial(jax.jit, static_argnames=("target_block_bytes",))
def global_max_pool1d(x, *, target_block_bytes: int = 8 * _MIB):
    """x: (N, C, L) -> (N, C, 1), max over L. Matches F.max_pool1d(x, kernel_size=L)."""
    N, C, L = x.shape
    dtype = x.dtype
    itemsize = jnp.dtype(dtype).itemsize
    R = N * C
    min_val = _min_value(dtype)

    row_tile, l_tile = _choose_tiles(R, L, itemsize, target_block_bytes)
    num_r = -(-R // row_tile)
    num_l = -(-L // l_tile)
    ragged_l = (L % l_tile) != 0

    x2 = x.reshape(R, L)  # contiguous -> free metadata reshape, no HBM copy

    if num_l == 1:
        # Whole length extent resident: reduce straight out of the input tile.
        def kernel(x_ref, o_ref):
            o_ref[...] = jnp.max(x_ref[...], axis=-1)[None, :]

        grid = (num_r,)
        in_specs = [pl.BlockSpec((row_tile, l_tile), lambda r: (r, 0))]
        out_specs = pl.BlockSpec((1, row_tile), lambda r: (0, r))
        scratch_shapes = []
        semantics = ("parallel",)
    else:
        n_fold = l_tile // _LANE

        def kernel(x_ref, o_ref, acc_ref):
            k = pl.program_id(1)
            xv = x_ref[...]
            if ragged_l:
                # Mask out-of-range columns of the ragged last L chunk with the
                # max-identity so OOB garbage never wins (no wrapper-side pad).
                col = jax.lax.broadcasted_iota(jnp.int32, xv.shape, 1) + k * l_tile
                xv = jnp.where(col < L, xv, min_val)

            # Fold this chunk into 128 lanes with static slices (pure VPU, no
            # relayout) so the accumulator is only (row_tile, 128).
            part = xv[:, :_LANE]
            for j in range(1, n_fold):
                part = jnp.maximum(part, xv[:, j * _LANE:(j + 1) * _LANE])

            @pl.when(k == 0)
            def _init():
                acc_ref[...] = part

            @pl.when(k > 0)
            def _update():
                acc_ref[...] = jnp.maximum(acc_ref[...], part)

            @pl.when(k == pl.num_programs(1) - 1)
            def _finalize():
                o_ref[...] = jnp.max(acc_ref[...], axis=-1)[None, :]

        grid = (num_r, num_l)  # reduction axis last
        in_specs = [pl.BlockSpec((row_tile, l_tile), lambda r, k: (r, k))]
        # Same output block index across k => resident across the reduction
        # axis, written only at the last k step (lane-dense store).
        out_specs = pl.BlockSpec((1, row_tile), lambda r, k: (0, r))
        scratch_shapes = [pltpu.VMEM((row_tile, _LANE), dtype)]
        semantics = ("parallel", "arbitrary")

    block_bytes = row_tile * l_tile * itemsize
    # Explicit scoped-VMEM limit: covers 2x double-buffered input + narrow acc
    # with headroom; raises v5e's 16 MiB default, stays under v7x's 64 MiB.
    vmem_limit = int(min(64 * _MIB, max(32 * _MIB, 3 * block_bytes + 2 * _MIB)))

    out = pl.pallas_call(
        kernel,
        out_shape=jax.ShapeDtypeStruct((1, R), dtype),
        grid_spec=pltpu.PrefetchScalarGridSpec(
            num_scalar_prefetch=0,
            grid=grid,
            in_specs=in_specs,
            out_specs=out_specs,
            scratch_shapes=scratch_shapes,
        ),
        compiler_params=pltpu.CompilerParams(
            dimension_semantics=semantics,
            vmem_limit_bytes=vmem_limit,
        ),
        cost_estimate=pl.CostEstimate(
            flops=int(R) * int(L),
            transcendentals=0,
            bytes_accessed=int(R) * int(L) * itemsize + int(R) * itemsize,
        ),
    )(x2)

    return out[0].reshape(N, C, 1)


if __name__ == "__main__":
    key = jax.random.PRNGKey(0)
    k1, k2, k3, k4, k5 = jax.random.split(key, 5)

    # Case 1: the module's small default shapes — single-block fast path.
    x1 = jax.random.normal(k1, (2, 4, 16), dtype=jnp.float32)
    out1 = jax.block_until_ready(global_max_pool1d(x1))
    ref1 = jnp.max(x1, axis=2, keepdims=True)
    assert out1.shape == (2, 4, 1), out1.shape
    assert jnp.array_equal(out1, ref1), "mismatch vs reference (case 1)"

    # Case 2: force the chunked-L accumulator path + in-kernel ragged-L mask.
    x2 = jax.random.normal(k2, (2, 3, 300), dtype=jnp.float32)
    out2 = jax.block_until_ready(global_max_pool1d(x2, target_block_bytes=4096))
    ref2 = jnp.max(x2, axis=2, keepdims=True)
    assert out2.shape == (2, 3, 1), out2.shape
    assert jnp.array_equal(out2, ref2), "mismatch vs reference (case 2)"

    # Case 3: bf16, odd row count — compute stays in bf16, full-dim block.
    x3 = jax.random.normal(k3, (1, 5, 40), dtype=jnp.bfloat16)
    out3 = jax.block_until_ready(global_max_pool1d(x3))
    ref3 = jnp.max(x3, axis=2, keepdims=True)
    assert out3.shape == (1, 5, 1), out3.shape
    assert jnp.array_equal(out3, ref3), "mismatch vs reference (case 3)"

    # Case 4: several full-L row blocks with a ragged last row block
    # (lane-dense (1, 128) output stores, no accumulator path).
    x4 = jax.random.normal(k4, (4, 95, 128), dtype=jnp.float32)
    out4 = jax.block_until_ready(global_max_pool1d(x4, target_block_bytes=65536))
    ref4 = jnp.max(x4, axis=2, keepdims=True)
    assert out4.shape == (4, 95, 1), out4.shape
    assert jnp.array_equal(out4, ref4), "mismatch vs reference (case 4)"

    # Case 5: many row blocks AND chunked ragged L (both grid axes + mask).
    x5 = jax.random.normal(k5, (2, 192, 200), dtype=jnp.float32)
    out5 = jax.block_until_ready(global_max_pool1d(x5, target_block_bytes=65536))
    ref5 = jnp.max(x5, axis=2, keepdims=True)
    assert out5.shape == (2, 192, 1), out5.shape
    assert jnp.array_equal(out5, ref5), "mismatch vs reference (case 5)"

    print("KERNEL_OK")
</pallas_src>

<mosaic_0001>
module attributes {stable_mosaic.version = 11 : i64} {
  func.func @kernel(%arg0: i32, %arg1: memref<8x16xf32, #tpu.memory_space<vmem>>, %arg2: memref<1x8xf32, #tpu.memory_space<vmem>>) attributes {dimension_semantics = [#tpu.dimension_semantics<parallel>], iteration_bounds = array<i64: 1>, scalar_prefetch = 0 : i64, scratch_operands = 0 : i64, tpu.core_type = #tpu.core_type<tc>, window_params = [{transform_indices = @transform_0, window_bounds = array<i64: 8, 16>}, {transform_indices = @transform_1, window_bounds = array<i64: 1, 8>}]} {
    %c0 = arith.constant 0 : index
    %c0_0 = arith.constant 0 : index
    %0 = vector.load %arg1[%c0, %c0_0] : memref<8x16xf32, #tpu.memory_space<vmem>>, vector<8x16xf32>
    %cst = arith.constant dense<0xFF800000> : vector<8xf32>
    %1 = vector.multi_reduction <maximumf>, %0, %cst [1] : vector<8x16xf32> to vector<8xf32>
    %2 = vector.shape_cast %1 : vector<8xf32> to vector<1x8xf32>
    %c0_1 = arith.constant 0 : index
    %c0_2 = arith.constant 0 : index
    %3 = vector.load %arg2[%c0_1, %c0_2] : memref<1x8xf32, #tpu.memory_space<vmem>>, vector<1x8xf32>
    tpu.vector_store %arg2[%c0_1, %c0_2], %2 {strides = array<i32>} : memref<1x8xf32, #tpu.memory_space<vmem>>, vector<1x8xf32>,
    return
  }
  func.func @transform_0(%arg0: i32) -> (i32, i32) {
    %c0_i32 = arith.constant 0 : i32
    %c0_i32_0 = arith.constant 0 : i32
    return %arg0, %c0_i32 : i32, i32
  }
  func.func @transform_1(%arg0: i32) -> (i32, i32) {
    %c0_i32 = arith.constant 0 : i32
    %c0_i32_0 = arith.constant 0 : i32
    return %c0_i32, %arg0 : i32, i32
  }
}

</mosaic_0001>

<bundles_post_ra>
// kernel: squeeze.1
= control target key start
LH: loop header
LB: loop body
LE: loop exit
PB: predicated region body
PF: predicated region fallthrough
CT: control target
= control target key end

     0   :  { %s85_s0 = inlined_call_operand.vmem [shape: f32[8], index: 0, kind: input, shape index: {}]   ;;  %s86_s1 = inlined_call_operand.hbm [shape: f32[2,4,1], index: 1, kind: output, shape index: {}]  }
   0x1   :  { %v5_v0 = vld [vmem:[%s85_s0] sm:$0x1] }
   0x2   :  { %2 = vsyncpa [#allocation1], 0  ;;  %6 = vst [vmem:[#allocation3] sm:$0x1] %v5_v0  ;;  %vm8_vm0 = vcmask 31744   ;;  %s58_s0 = smov 124  }
   0x3   :  { %s59_s8 = smov [#allocation0]  }
   0x4   :  { %s26_s9 = sshll.u32 %s59_s8, 4  ;;  %s27_s9 = int_to_ptr.vmem [resolvable:$true] %s26_s9 }
   0x5   :  { %s34_s10 = scalar_lea.vmem %s27_s9, 32  ;;  %p39_p1 = scmp.lt.s32.totalorder %s27_s9, %s27_s9 }
   0x6   :  { %p35_p0 = scmp.ne.s32.totalorder %s27_s9, %s34_s10  ;;  %p40_p2 = scmp.lt.s32.totalorder %s34_s10, %s34_s10 }
   0x8   :  { %p41_p3 = por %p40_p2, %p39_p1 }
   0x9   :  { %v10_v1 = vld [vmem:[#allocation3] sm:$0x1]  }
   0xa   :  { %v7_v2 = vld [vmem:[#allocation3] sm:$0x1]   ;;  %11 = vrot.lane.b32.xlu0 %v10_v1, %s58_s0  ;;  %p42_p4 = pnand %p41_p3, %p35_p0 }
   0xb   :  { %9 = vst.msk [vmem:[#allocation2] sm:$0x1] %vm8_vm0, %v7_v2  }
  0x7c   :  { %v12_v3 = vpop.permute.xlu0 %11  }
  0x7d   :  { %15 = vst.msk [vmem:[#allocation2 + $0x1] sm:$0x1] %vm8_vm0, %v12_v3  }
  0x84   :  { %v19_v4 = vld [vmem:[#allocation2] sm:$0x3] }
  0x85   :  { %21 = vst [vmem:[#allocation0] sm:$0x3] %v19_v4 }
  0x86   :  { %45 = shalt.err (!%p42_p4)
}
  0x87   :  { %s46_s13 = scalar_lea.hbm %s86_s1, 32 }
  0x88   :  { %p47_p5 = scmp.ne.s32.totalorder %s86_s1, %s46_s13  ;;  %p50_p6 = scmp.lt.u32.totalorder %s46_s13, %s86_s1 }
  0x8a   :  { %p52_p7 = pnand %p50_p6, %p47_p5 }
  0x8c   :  { %55 = shalt.err (!%p52_p7)
}
  0x8d   :  { %29 = dma.vmem_to_hbm [thread:$0]  %s27_s9, 32, %s86_s1, [#allocation1]  }
  0x8e   :  { %56 = dma.done.wait [#allocation1], 32  }
  0x8f   :  { %57 = vsyncadd [#allocation1], 4294967264 }
  0x90   :  { %31 = vsyncpa [#allocation1], 1 }

// kernel: global_max_pool1d.1
= control target key start
LH: loop header
LB: loop body
LE: loop exit
PB: predicated region body
PF: predicated region fallthrough
CT: control target
= control target key end

     0   :  { %6 = vsyncpa [#allocation3], 0  ;;  %s65_s6 = smov [#allocation2]   ;;  %s91_s0 = inlined_call_operand.hbm [shape: f32[8,16], index: 0, kind: input, shape index: {}]   ;;  %s92_s1 = inlined_call_operand.vmem [shape: f32[1,8], index: 1, kind: output, shape index: {}]  }
   0x1   :  { %s13_s7 = sshll.u32 %s65_s6, 4  ;;  %s41_s10 = scalar_lea.hbm %s91_s0, 128  ;;  %s14_s7 = int_to_ptr.vmem [resolvable:$true] %s13_s7 }
   0x2   :  { %p42_p0 = scmp.ne.s32.totalorder %s91_s0, %s41_s10  ;;  %p45_p1 = scmp.lt.u32.totalorder %s41_s10, %s91_s0 }
   0x4   :  { %p47_p2 = pnand %p45_p1, %p42_p0 }
   0x6   :  { %50 = shalt.err (!%p47_p2)
}
   0x7   :  { %s51_s15 = scalar_lea.vmem %s14_s7, 128  ;;  %p56_p4 = scmp.lt.s32.totalorder %s14_s7, %s14_s7 }
   0x8   :  { %p52_p3 = scmp.ne.s32.totalorder %s14_s7, %s51_s15  ;;  %p57_p5 = scmp.lt.s32.totalorder %s51_s15, %s51_s15 }
   0xa   :  { %p58_p6 = por %p57_p5, %p56_p4 }
   0xc   :  { %p59_p7 = pnand %p58_p6, %p52_p3 }
   0xe   :  { %62 = shalt.err (!%p59_p7)
}
   0xf   :  { %16 = dma.hbm_to_vmem [thread:$0]  %s91_s0, 128, %s14_s7, [#allocation3]  }
  0x10   :  { %63 = dma.done.wait [#allocation3], 128  }
  0x11   :  { %64 = vsyncadd [#allocation3], 4294967168  ;;  %vm21_vm0 = vcmask 130048   ;;  %v20_v0 = vld [vmem:[#allocation2] sm:$0xff]  ;;  %v26_v2 = vlaneseq  ;;  %vm33_vm1 = vcmask 57344  }
  0x12   :  { %v22_v1 = vsel %vm21_vm0, %v20_v0, -inf }
  0x13   :  { %23 = vmax.xlane.f32.xlu0 %v22_v1  ;;  %v27_v3 = vand.u32 127, %v26_v2  ;;  %v29_v4 = vshrl.u32 %v26_v2, 7 }
  0x15   :  { %v30_v5 = vsub.s32 %v27_v3, %v29_v4 }
  0xa0   :  { %v24_v6 = vpop.xlane.xlu0 %23 }
  0xa1   :  { %v31_v7 = vrot.slane %v24_v6, %v30_v5 }
  0xa3   :  { %34 = vst.msk [vmem:[%s92_s1] sm:$0x1] %vm33_vm1, %v31_v7 }
  0xa4   :  { %39 = vsyncpa [#allocation3], 1 }

</bundles_post_ra>
